<compile_context>
chip_gen: v5e
topology: v5e:2x2
jax: 0.10.0
libtpu: 0.0.40
codegen_flags: <defaults>
</compile_context>

<pallas_src>
import functools
import math

import jax
import jax.numpy as jnp
from jax.experimental import pallas as pl
from jax.experimental.pallas import tpu as pltpu


def _build_pe(d_model: int, max_len: int, scale: float,
              dtype=jnp.float32) -> jnp.ndarray:
    """Deterministic positional-encoding buffer, same as the PyTorch __init__.

    Built once at init in the activation dtype so the forward pass never has
    to re-materialize (slice/cast/reshape) it.
    """
    position = jnp.arange(max_len, dtype=jnp.float32)[:, None]           # [max_len, 1]
    div_term = jnp.exp(
        jnp.arange(0, d_model, 2, dtype=jnp.float32) * (-math.log(10000.0) / d_model)
    )                                                                    # [d_model//2]
    pe = jnp.zeros((max_len, d_model), dtype=jnp.float32)
    pe = pe.at[:, 0::2].set(jnp.sin(position * div_term) * scale)
    pe = pe.at[:, 1::2].set(jnp.cos(position * div_term) * scale)
    return pe.astype(dtype)


def _concat_pe_kernel(x_ref, pe_ref, o_ref, *, dx: int, lane_aligned: bool):
    # x_ref : (TB, TS, Dx)   pe_ref : (TS, Dm)   o_ref : (TB, TS, Dx + Dm)
    x = x_ref[...]
    pe = pe_ref[...]
    # Broadcast pe across the batch tile in-register (read once from HBM).
    pe_b = jnp.broadcast_to(pe[None, :, :], (x.shape[0], x.shape[1], pe.shape[1]))
    if lane_aligned:
        # Dx is a multiple of 128: both slice stores are full-lane-dense vst.
        o_ref[:, :, :dx] = x
        o_ref[:, :, dx:] = pe_b
    else:
        # Unaligned feature split: assemble the full output row in registers
        # (cross-lane work rides otherwise-idle XLU/VPU slots in this
        # HBM-bound copy) and issue a single full-width store instead of two
        # masked sub-128-lane stores.
        o_ref[...] = jnp.concatenate([x, pe_b], axis=-1)


def _vmem_capacity_bytes() -> int:
    """Generation-aware VMEM capacity (v5e/v6e: 128 MiB, v7x: 64 MiB/TC)."""
    try:
        return int(pltpu.get_tpu_info().vmem_capacity_bytes)
    except Exception:
        return 64 << 20  # conservative default (v7x per-core VMEM)


def positional_encoding_forward(x: jnp.ndarray, pe_full: jnp.ndarray) -> jnp.ndarray:
    """x: [B, S, Dx]; pe_full: [max_len, Dm] -> [B, S, Dx+Dm] (dtype of x)."""
    B, S, Dx = x.shape
    max_len, Dm = pe_full.shape
    if S > max_len:
        raise ValueError(f"seq_len {S} exceeds max_len {max_len}")
    if pe_full.dtype != x.dtype:
        # One-time fallback; normally pe is already built in the activation
        # dtype at init so this branch never materializes anything.
        pe_full = pe_full.astype(x.dtype)

    Dout = Dx + Dm
    itemsize = jnp.dtype(x.dtype).itemsize

    # --- tile sizing from a VMEM byte budget -------------------------------
    vmem = _vmem_capacity_bytes()
    # Scoped VMEM limit: generous on 128 MiB parts, safe on v7x's 64 MiB.
    vmem_limit = int(min(vmem // 2, 64 << 20))
    # Per-step budget for the double-buffered x/pe/out tiles (~10 MiB on v7x,
    # ~21 MiB on v5e/v6e), leaving ample headroom under vmem_limit.
    tile_budget = int(min(vmem // 6, 24 << 20))

    def rows_for(tb: int) -> int:
        # Double-buffered bytes per seq-row per grid step.
        per_row = 2 * (tb * Dx + Dm + tb * Dout) * itemsize
        return max(tile_budget // per_row, 1)

    # Keep the whole batch per step unless the features are so wide that even
    # 8 seq rows would not fit; then halve the batch tile.
    TB = B
    while TB > 1 and rows_for(TB) < 8:
        TB = max(1, TB // 2)
    cap_rows = int(rows_for(TB))

    if S <= cap_rows:
        TS = S  # whole sequence in one tile, no partial blocks
    else:
        ts = max((cap_rows // 8) * 8, 8)
        TS = ts
        # Prefer a divisor of S (no padded final tile) if one exists within 2x
        # of the budget-derived tile size.
        for cand in range(ts, max(8, ts // 2) - 1, -8):
            if S % cand == 0:
                TS = cand
                break

    # pe is fed as the full registered buffer (no per-call copy). Its block's
    # sublane dim must be a multiple of 8 or equal its array dim; only for a
    # tiny/ragged full-sequence tile do we fall back to a one-off slice.
    if TS == S and S % 8 != 0 and S != max_len:
        pe_in = pe_full[:S]
    else:
        pe_in = pe_full

    # Grid: seq tiles outer, batch tiles inner -> the pe block index is
    # constant across consecutive (inner) iterations, so it is not re-fetched.
    grid = (pl.cdiv(S, TS), pl.cdiv(B, TB))

    kernel = functools.partial(_concat_pe_kernel, dx=Dx,
                               lane_aligned=(Dx % 128 == 0))

    out_shape = jax.ShapeDtypeStruct((B, S, Dout), x.dtype)

    return pl.pallas_call(
        kernel,
        out_shape=out_shape,
        grid_spec=pltpu.PrefetchScalarGridSpec(
            num_scalar_prefetch=0,
            grid=grid,
            in_specs=[
                pl.BlockSpec((TB, TS, Dx), lambda s, b: (b, s, 0)),   # x tile
                pl.BlockSpec((TS, Dm), lambda s, b: (s, 0)),          # pe tile (batch-invariant)
            ],
            out_specs=pl.BlockSpec((TB, TS, Dout), lambda s, b: (b, s, 0)),
        ),
        compiler_params=pltpu.CompilerParams(
            # Pure copy, no reduction axis: both axes parallel so a 2-TC chip
            # (v7x) can shard the store traffic across cores when there are
            # enough seq tiles.
            dimension_semantics=("parallel", "parallel"),
            vmem_limit_bytes=vmem_limit,
        ),
    )(x, pe_in)
    # TODO(synk): nn.Dropout(p=0.0) is identity here; a p>0 training-mode
    # dropout would need pltpu.prng_seed/prng_random_bits inside the kernel.
    # Further optional wins (not needed for correctness): pl.Buffered(3) on
    # x/out if a v7x trace shows exposed DMA, or generating pe on the fly
    # (EUP sin/cos) to drop the pe HBM read entirely.


if __name__ == "__main__":
    # Small shapes consistent with the module: batch=2, seq=8, d_x=32, d_model=32.
    B, S, Dx = 2, 8, 32
    d_model, max_len, scale = 32, 5000, 1.0

    key = jax.random.PRNGKey(0)
    x = jax.random.normal(key, (B, S, Dx), dtype=jnp.float32)

    # Registered buffer, built once at "init" in the activation dtype.
    pe_full = _build_pe(d_model, max_len, scale, dtype=x.dtype)

    out = jax.block_until_ready(positional_encoding_forward(x, pe_full))

    # Pure-JAX reference check.
    ref = jnp.concatenate(
        [x, jnp.broadcast_to(pe_full[None, :S, :], (B, S, d_model))], axis=-1
    )
    assert out.shape == (B, S, Dx + d_model)
    assert jnp.allclose(out, ref, atol=1e-6), "mismatch vs reference"

    print("KERNEL_OK")
</pallas_src>

<mosaic_0001>
module attributes {stable_mosaic.version = 11 : i64} {
  func.func @_concat_pe_kernel(%arg0: i32, %arg1: i32, %arg2: memref<2x8x32xf32, #tpu.memory_space<vmem>>, %arg3: memref<8x32xf32, #tpu.memory_space<vmem>>, %arg4: memref<2x8x64xf32, #tpu.memory_space<vmem>>) attributes {dimension_semantics = [#tpu.dimension_semantics<parallel>, #tpu.dimension_semantics<parallel>], iteration_bounds = array<i64: 1, 1>, scalar_prefetch = 0 : i64, scratch_operands = 0 : i64, tpu.core_type = #tpu.core_type<tc>, window_params = [{transform_indices = @transform_0, window_bounds = array<i64: 2, 8, 32>}, {transform_indices = @transform_1, window_bounds = array<i64: 8, 32>}, {transform_indices = @transform_2, window_bounds = array<i64: 2, 8, 64>}]} {
    %c0 = arith.constant 0 : index
    %c0_0 = arith.constant 0 : index
    %c0_1 = arith.constant 0 : index
    %0 = vector.load %arg2[%c0, %c0_0, %c0_1] : memref<2x8x32xf32, #tpu.memory_space<vmem>>, vector<2x8x32xf32>
    %c0_2 = arith.constant 0 : index
    %c0_3 = arith.constant 0 : index
    %1 = vector.load %arg3[%c0_2, %c0_3] : memref<8x32xf32, #tpu.memory_space<vmem>>, vector<8x32xf32>
    %2 = vector.shape_cast %1 : vector<8x32xf32> to vector<1x8x32xf32>
    %3 = vector.shape_cast %2 : vector<1x8x32xf32> to vector<1x8x32xf32>
    %4 = vector.broadcast %3 : vector<1x8x32xf32> to vector<2x8x32xf32>
    %5 = tpu.concatenate %0, %4 in 2 : vector<2x8x32xf32>, vector<2x8x32xf32> -> vector<2x8x64xf32>
    %c0_4 = arith.constant 0 : index
    %c0_5 = arith.constant 0 : index
    %c0_6 = arith.constant 0 : index
    %6 = vector.load %arg4[%c0_4, %c0_5, %c0_6] : memref<2x8x64xf32, #tpu.memory_space<vmem>>, vector<2x8x64xf32>
    tpu.vector_store %arg4[%c0_4, %c0_5, %c0_6], %5 {strides = array<i32>} : memref<2x8x64xf32, #tpu.memory_space<vmem>>, vector<2x8x64xf32>,
    return
  }
  func.func @transform_0(%arg0: i32, %arg1: i32) -> (i32, i32, i32) {
    %c0_i32 = arith.constant 0 : i32
    %c0_i32_0 = arith.constant 0 : i32
    return %arg1, %arg0, %c0_i32 : i32, i32, i32
  }
  func.func @transform_1(%arg0: i32, %arg1: i32) -> (i32, i32) {
    %c0_i32 = arith.constant 0 : i32
    %c0_i32_0 = arith.constant 0 : i32
    return %arg0, %c0_i32 : i32, i32
  }
  func.func @transform_2(%arg0: i32, %arg1: i32) -> (i32, i32, i32) {
    %c0_i32 = arith.constant 0 : i32
    %c0_i32_0 = arith.constant 0 : i32
    return %arg1, %arg0, %c0_i32 : i32, i32, i32
  }
}

</mosaic_0001>

<bundles_post_ra>
// kernel: tpu_custom_call.1
= control target key start
LH: loop header
LB: loop body
LE: loop exit
PB: predicated region body
PF: predicated region fallthrough
CT: control target
= control target key end

     0   :  { %s73_s11 = smov 32   ;;  %s104_s0 = inlined_call_operand.vmem [shape: f32[2,8,32], index: 0, kind: input, shape index: {}]   ;;  %s105_s1 = inlined_call_operand.vmem [shape: f32[5000,32], index: 1, kind: input, shape index: {}]   ;;  %s106_s2 = inlined_call_operand.hbm [shape: f32[2,8,64], index: 2, kind: output, shape index: {}]  }
   0x1   :  { %v14_v0 = vld [vmem:[%s105_s1] sm:$0xff] }
   0x2   :  { %16 = vrot.lane.b32.xlu0 %v14_v0, %s73_s11 }
   0x3   :  { %7 = vsyncpa [#allocation3], 0  ;;  %s74_s12 = smov [#allocation2]   ;;  %s31_s16 = sshll.u32 %s106_s2, 4  ;;  %v12_v1 = vld [vmem:[%s104_s0] sm:$0xff]  ;;  %v13_v2 = vld [vmem:[%s104_s0 + $0x8] sm:$0xff]  ;;  %s32_s16 = int_to_ptr.hbm [resolvable:$true] %s31_s16 }
   0x4   :  { %s29_s13 = sshll.u32 %s74_s12, 4  ;;  %vm19_vm0 = vcmask 261120   ;;  %vm22_vm1 = vcmask 523264   ;;  %s75_s1 = smov 128   ;;  %s30_s13 = int_to_ptr.vmem [resolvable:$true] %s29_s13 }
   0x5   :  { %s76_s21 = smov 8  }
  0x74   :  { %v17_v3 = vpop.permute.xlu0 %16 }
  0x75   :  { %v20_v4 = vsel %vm19_vm0, %v12_v1, %v17_v3  ;;  %v21_v5 = vsel %vm19_vm0, %v13_v2, %v17_v3 }
  0x76   :  { %23 = vst.msk [vmem:[#allocation2] sm:$0xff] %vm22_vm1, %v20_v4 }
  0x77   :  { %24 = vst.msk [vmem:[#allocation2 + $0x8] sm:$0xff] %vm22_vm1, %v21_v5 }
  0x78   :  { %37 = dma.vmem_to_hbm [thread:$0]  %s30_s13, 256, %s32_s16, [#allocation3], %s75_s1, %s75_s1, %s76_s21  }
  0x79   :  { %71 = dma.done.wait [#allocation3], 256  }
  0x7a   :  { %72 = vsyncadd [#allocation3], 4294967040 }
  0x7b   :  { %42 = vsyncpa [#allocation3], 1 }

</bundles_post_ra>
